<compile_context>
chip_gen: v5e
topology: v5e:2x2
jax: 0.10.0
libtpu: 0.0.40
codegen_flags: <defaults>
</compile_context>

<pallas_src>
import math

import jax
import jax.numpy as jnp
from jax.experimental import pallas as pl
from jax.experimental.pallas import tpu as pltpu


def _round_up(x, m):
    return ((x + m - 1) // m) * m


def _choose_tiling(n, unit, max_tile):
    """Pad n up to a multiple of `unit` and split it into equal tiles (multiples of
    `unit`, at most ~max_tile), minimizing padding: at most one extra `unit` block
    per grid step instead of rounding up to a fixed power-of-two tile."""
    n_pad0 = _round_up(max(n, 1), unit)
    max_tile = max(unit, (max_tile // unit) * unit)
    steps = -(-n_pad0 // max_tile)                      # ceil
    tile = unit * (-(-(n_pad0 // unit) // steps))       # unit * ceil(nblocks/steps)
    n_pad = tile * (-(-n_pad0 // tile))
    return n_pad, tile


# ----------------------------- kernels ---------------------------------------


def _make_noisy_kernel(single_k_step):
    def kernel(x_ref, epsi_ref, wmu_ref, wsig_ref, epso_ref, bmu_ref, bsig_ref, o_ref):
        x = x_ref[...]
        # Fold eps_in into the activations (lane-dense (1, tk) row, sublane
        # broadcast): the noise then goes through the MXU, not the VPU.
        xs = (x.astype(jnp.float32) * epsi_ref[...]).astype(x.dtype)
        eo = epso_ref[...]                                             # (1, to) f32
        part = (jnp.dot(x, wmu_ref[...], preferred_element_type=jnp.float32)
                + jnp.dot(xs, wsig_ref[...], preferred_element_type=jnp.float32) * eo)
        b_eff = bmu_ref[...] + bsig_ref[...] * eo                      # (1, to) f32

        if single_k_step:
            o_ref[...] = part + b_eff
        else:
            k = pl.program_id(2)

            @pl.when(k == 0)
            def _():
                o_ref[...] = part          # first K step: plain store (no zero-init)

            @pl.when(k > 0)
            def _():
                o_ref[...] += part         # accumulate directly into the f32 output

            @pl.when(k == pl.num_programs(2) - 1)
            def _():
                o_ref[...] += b_eff        # bias epilogue once per (i, j) tile

    return kernel


def _make_plain_kernel(single_k_step):
    def kernel(x_ref, wmu_ref, bmu_ref, o_ref):
        part = jnp.dot(x_ref[...], wmu_ref[...], preferred_element_type=jnp.float32)

        if single_k_step:
            o_ref[...] = part + bmu_ref[...]
        else:
            k = pl.program_id(2)

            @pl.when(k == 0)
            def _():
                o_ref[...] = part

            @pl.when(k > 0)
            def _():
                o_ref[...] += part

            @pl.when(k == pl.num_programs(2) - 1)
            def _():
                o_ref[...] += bmu_ref[...]

    return kernel


# ----------------------------- prepare (hoisted out of the hot path) ----------


def prepare_noisy_linear(params, *, compute_dtype=jnp.bfloat16,
                         tk_max=512, to_max=512):
    """Pad + cast the parameters ONCE (per reset_parameters / reset_noise), so the
    per-forward HBM traffic over the weights is exactly one bf16 read of mu+sigma."""
    w_mu = params["weight_mu"]
    in_f, out_f = w_mu.shape
    f32 = jnp.float32

    Kp, tk = _choose_tiling(in_f, 128, tk_max)
    Op, to = _choose_tiling(out_f, 128, to_max)
    pad_k, pad_o = Kp - in_f, Op - out_f

    wmu = jnp.pad(w_mu.astype(f32), ((0, pad_k), (0, pad_o))).astype(compute_dtype)
    wsig = jnp.pad(params["weight_sigma"].astype(f32),
                   ((0, pad_k), (0, pad_o))).astype(compute_dtype)
    eps_in = jnp.pad(params["eps_in"].astype(f32), (0, pad_k)).reshape(1, Kp)
    eps_out = jnp.pad(params["eps_out"].astype(f32), (0, pad_o)).reshape(1, Op)
    bmu = jnp.pad(params["bias_mu"].astype(f32), (0, pad_o)).reshape(1, Op)
    bsig = jnp.pad(params["bias_sigma"].astype(f32), (0, pad_o)).reshape(1, Op)

    return dict(wmu=wmu, wsig=wsig, eps_in=eps_in, eps_out=eps_out,
                bmu=bmu, bsig=bsig,
                in_features=in_f, out_features=out_f,
                Kp=Kp, Op=Op, tk=tk, to=to, compute_dtype=compute_dtype)


# ----------------------------- forward wrapper ---------------------------------


def noisy_linear_forward(x, prep, *, use_noise=True, tb_max=256):
    """Pallas forward of NoisyLinear.  x: (..., in_features).  Returns f32 (..., out)."""
    in_f, out_f = prep["in_features"], prep["out_features"]
    Kp, Op, tk, to = prep["Kp"], prep["Op"], prep["tk"], prep["to"]
    cdt = prep["compute_dtype"]

    lead = x.shape[:-1]
    B = math.prod(lead) if lead else 1
    x2 = x.reshape(B, in_f)

    Bp, tb = _choose_tiling(B, 8, tb_max)
    # v7x megacore: ensure >=2 iterations on the parallel axes so both TCs get work.
    if (Bp // tb) * (Op // to) == 1 and tb % 16 == 0:
        tb //= 2

    if (Bp, Kp) != (B, in_f):
        x2 = jnp.pad(x2, ((0, Bp - B), (0, Kp - in_f)))      # zero pad: exact
    xp = x2.astype(cdt)

    n_k = Kp // tk
    grid = (Bp // tb, Op // to, n_k)

    x_spec = pl.BlockSpec((tb, tk), lambda i, j, k: (i, k))
    w_spec = pl.BlockSpec((tk, to), lambda i, j, k: (k, j))
    krow_spec = pl.BlockSpec((1, tk), lambda i, j, k: (0, k))   # eps_in row (lane-dense)
    orow_spec = pl.BlockSpec((1, to), lambda i, j, k: (0, j))   # eps_out / bias rows
    out_spec = pl.BlockSpec((tb, to), lambda i, j, k: (i, j))   # lane-dense f32 output

    if use_noise:
        kernel = _make_noisy_kernel(n_k == 1)
        args = (xp, prep["eps_in"], prep["wmu"], prep["wsig"],
                prep["eps_out"], prep["bmu"], prep["bsig"])
        in_specs = [x_spec, krow_spec, w_spec, w_spec, orow_spec, orow_spec, orow_spec]
        flops = 4 * Bp * Kp * Op
        wbytes = 2 * prep["wmu"].size * prep["wmu"].dtype.itemsize
    else:
        kernel = _make_plain_kernel(n_k == 1)
        args = (xp, prep["wmu"], prep["bmu"])
        in_specs = [x_spec, w_spec, orow_spec]
        flops = 2 * Bp * Kp * Op
        wbytes = prep["wmu"].size * prep["wmu"].dtype.itemsize

    cost = pl.CostEstimate(
        flops=flops, transcendentals=0,
        bytes_accessed=xp.size * xp.dtype.itemsize + wbytes + Bp * Op * 4)

    out = pl.pallas_call(
        kernel,
        out_shape=jax.ShapeDtypeStruct((Bp, Op), jnp.float32),
        grid_spec=pltpu.PrefetchScalarGridSpec(
            num_scalar_prefetch=0,
            grid=grid,
            in_specs=in_specs,
            out_specs=out_spec,
        ),
        compiler_params=pltpu.CompilerParams(
            dimension_semantics=("parallel", "parallel", "arbitrary"),
        ),
        cost_estimate=cost,
    )(*args)

    return out[:B, :out_f].reshape(*lead, out_f)


# ----------------------------- init / noise (host side, mirrors PyTorch) ------


def scale_noise(key, size):
    """NoisyLinear._scale_noise: f(z) = sign(z) * sqrt(|z|), z ~ N(0,1)."""
    z = jax.random.normal(key, (size,), dtype=jnp.float32)
    return jnp.sign(z) * jnp.sqrt(jnp.abs(z))


def init_noisy_linear_params(key, in_features, out_features, std_init=0.1, bias=True):
    """Mirror NoisyLinear.reset_parameters() + reset_noise().  Weights are stored
    transposed, (in_features, out_features); i.i.d. uniform init makes this
    numerically equivalent to PyTorch's (out, in) layout."""
    k_w, k_b, k_ei, k_eo = jax.random.split(key, 4)
    mu_range = 1.0 / math.sqrt(in_features)
    weight_mu = jax.random.uniform(k_w, (in_features, out_features), jnp.float32,
                                   -mu_range, mu_range)
    weight_sigma = jnp.full((in_features, out_features),
                            std_init / math.sqrt(in_features), jnp.float32)
    if bias:
        bias_mu = jax.random.uniform(k_b, (out_features,), jnp.float32,
                                     -mu_range, mu_range)
        bias_sigma = jnp.full((out_features,), std_init / math.sqrt(out_features),
                              jnp.float32)
    else:
        bias_mu = jnp.zeros((out_features,), jnp.float32)
        bias_sigma = jnp.zeros((out_features,), jnp.float32)
    # reset_noise(): factorized noise; weight_epsilon == outer(eps_out, eps_in).
    eps_in = scale_noise(k_ei, in_features)
    eps_out = scale_noise(k_eo, out_features)
    return dict(weight_mu=weight_mu, weight_sigma=weight_sigma,
                bias_mu=bias_mu, bias_sigma=bias_sigma,
                eps_in=eps_in, eps_out=eps_out)


# ----------------------------- references -------------------------------------


def reference_forward(x, params, *, use_noise=True, compute_dtype=jnp.bfloat16):
    """Plain-JAX reference with the SAME factorized dtype pipeline as the kernel."""
    w_mu = params["weight_mu"]
    in_f, out_f = w_mu.shape
    x2 = x.reshape(-1, in_f)
    xb = x2.astype(compute_dtype)
    y = jnp.dot(xb, w_mu.astype(compute_dtype), preferred_element_type=jnp.float32)
    if use_noise:
        xs = (xb.astype(jnp.float32) * params["eps_in"][None, :]).astype(compute_dtype)
        y = y + jnp.dot(xs, params["weight_sigma"].astype(compute_dtype),
                        preferred_element_type=jnp.float32) * params["eps_out"][None, :]
        b = params["bias_mu"] + params["bias_sigma"] * params["eps_out"]
    else:
        b = params["bias_mu"]
    return (y + b).reshape(*x.shape[:-1], out_f)


def reference_forward_f32(x, params, *, use_noise=True):
    """Full-f32 math (PyTorch semantics) for a looser semantic check."""
    w = params["weight_mu"]
    in_f, out_f = w.shape
    if use_noise:
        w = w + params["weight_sigma"] * (params["eps_in"][:, None]
                                          * params["eps_out"][None, :])
        b = params["bias_mu"] + params["bias_sigma"] * params["eps_out"]
    else:
        b = params["bias_mu"]
    y = x.reshape(-1, in_f) @ w + b
    return y.reshape(*x.shape[:-1], out_f)


# ----------------------------- demo -------------------------------------------


if __name__ == "__main__":
    key = jax.random.PRNGKey(0)
    k_x, k_p = jax.random.split(key)

    # Small shapes consistent with the module; deliberately non-aligned to exercise
    # the batch / K / out-features padding paths.
    batch, seq, in_features, out_features = 2, 8, 200, 72
    x = jax.random.normal(k_x, (batch, seq, in_features), dtype=jnp.float32)
    params = init_noisy_linear_params(k_p, in_features, out_features, std_init=0.1)

    # Pad + bf16-cast the weights ONCE (per parameter / reset_noise update).
    prep = prepare_noisy_linear(params)

    # Noisy path (training / sampling=True: the default forward) — single K step.
    out_noisy = noisy_linear_forward(x, prep, use_noise=True)
    jax.block_until_ready(out_noisy)
    ref_noisy = reference_forward(x, params, use_noise=True)
    ref_noisy_f32 = reference_forward_f32(x, params, use_noise=True)
    assert out_noisy.shape == (batch, seq, out_features)
    assert jnp.allclose(out_noisy, ref_noisy, atol=5e-3, rtol=5e-3), \
        float(jnp.max(jnp.abs(out_noisy - ref_noisy)))
    assert jnp.allclose(out_noisy, ref_noisy_f32, atol=5e-2, rtol=5e-2), \
        float(jnp.max(jnp.abs(out_noisy - ref_noisy_f32)))

    # Same layer with small forced tiles: exercises the multi-K accumulation path.
    prep_small = prepare_noisy_linear(params, tk_max=128, to_max=128)
    out_noisy_mk = noisy_linear_forward(x, prep_small, use_noise=True, tb_max=8)
    jax.block_until_ready(out_noisy_mk)
    assert jnp.allclose(out_noisy_mk, ref_noisy, atol=5e-3, rtol=5e-3), \
        float(jnp.max(jnp.abs(out_noisy_mk - ref_noisy)))

    # Deterministic path (noise_override=False / eval without sampling).
    out_plain = noisy_linear_forward(x, prep, use_noise=False)
    jax.block_until_ready(out_plain)
    ref_plain = reference_forward(x, params, use_noise=False)
    assert out_plain.shape == (batch, seq, out_features)
    assert jnp.allclose(out_plain, ref_plain, atol=5e-3, rtol=5e-3), \
        float(jnp.max(jnp.abs(out_plain - ref_plain)))

    print("KERNEL_OK")
</pallas_src>

<mosaic_0001>
module attributes {stable_mosaic.version = 11 : i64} {
  func.func @kernel(%arg0: i32, %arg1: i32, %arg2: i32, %arg3: memref<8x256xbf16, #tpu.memory_space<vmem>>, %arg4: memref<1x256xf32, #tpu.memory_space<vmem>>, %arg5: memref<256x128xbf16, #tpu.memory_space<vmem>>, %arg6: memref<256x128xbf16, #tpu.memory_space<vmem>>, %arg7: memref<1x128xf32, #tpu.memory_space<vmem>>, %arg8: memref<1x128xf32, #tpu.memory_space<vmem>>, %arg9: memref<1x128xf32, #tpu.memory_space<vmem>>, %arg10: memref<8x128xf32, #tpu.memory_space<vmem>>) attributes {dimension_semantics = [#tpu.dimension_semantics<parallel>, #tpu.dimension_semantics<parallel>, #tpu.dimension_semantics<arbitrary>], iteration_bounds = array<i64: 2, 1, 1>, scalar_prefetch = 0 : i64, scratch_operands = 0 : i64, tpu.core_type = #tpu.core_type<tc>, window_params = [{transform_indices = @transform_0, window_bounds = array<i64: 8, 256>}, {transform_indices = @transform_1, window_bounds = array<i64: 1, 256>}, {transform_indices = @transform_2, window_bounds = array<i64: 256, 128>}, {transform_indices = @transform_3, window_bounds = array<i64: 256, 128>}, {transform_indices = @transform_4, window_bounds = array<i64: 1, 128>}, {transform_indices = @transform_5, window_bounds = array<i64: 1, 128>}, {transform_indices = @transform_6, window_bounds = array<i64: 1, 128>}, {transform_indices = @transform_7, window_bounds = array<i64: 8, 128>}]} {
    %c0 = arith.constant 0 : index
    %c0_0 = arith.constant 0 : index
    %0 = vector.load %arg3[%c0, %c0_0] : memref<8x256xbf16, #tpu.memory_space<vmem>>, vector<8x256xbf16>
    %1 = arith.extf %0 : vector<8x256xbf16> to vector<8x256xf32>
    %c0_1 = arith.constant 0 : index
    %c0_2 = arith.constant 0 : index
    %2 = vector.load %arg4[%c0_1, %c0_2] : memref<1x256xf32, #tpu.memory_space<vmem>>, vector<1x256xf32>
    %3 = vector.broadcast %2 : vector<1x256xf32> to vector<8x256xf32>
    %4 = arith.mulf %1, %3 : vector<8x256xf32>
    %5 = arith.truncf %4 : vector<8x256xf32> to vector<8x256xbf16>
    %c0_3 = arith.constant 0 : index
    %c0_4 = arith.constant 0 : index
    %6 = vector.load %arg7[%c0_3, %c0_4] : memref<1x128xf32, #tpu.memory_space<vmem>>, vector<1x128xf32>
    %c0_5 = arith.constant 0 : index
    %c0_6 = arith.constant 0 : index
    %7 = vector.load %arg5[%c0_5, %c0_6] : memref<256x128xbf16, #tpu.memory_space<vmem>>, vector<256x128xbf16>
    %cst = arith.constant dense<0.000000e+00> : vector<8x128xf32>
    %8 = tpu.matmul %0, %7, %cst {dimension_numbers = #tpu.dot_dimension_numbers<[1], [0], [0], [1], [0, 0, 1, 1], [], []>} : vector<8x256xbf16>, vector<256x128xbf16>, vector<8x128xf32> -> vector<8x128xf32>
    %c0_7 = arith.constant 0 : index
    %c0_8 = arith.constant 0 : index
    %9 = vector.load %arg6[%c0_7, %c0_8] : memref<256x128xbf16, #tpu.memory_space<vmem>>, vector<256x128xbf16>
    %cst_9 = arith.constant dense<0.000000e+00> : vector<8x128xf32>
    %10 = tpu.matmul %5, %9, %cst_9 {dimension_numbers = #tpu.dot_dimension_numbers<[1], [0], [0], [1], [0, 0, 1, 1], [], []>} : vector<8x256xbf16>, vector<256x128xbf16>, vector<8x128xf32> -> vector<8x128xf32>
    %11 = vector.broadcast %6 : vector<1x128xf32> to vector<8x128xf32>
    %12 = arith.mulf %10, %11 : vector<8x128xf32>
    %13 = arith.addf %8, %12 : vector<8x128xf32>
    %c0_10 = arith.constant 0 : index
    %c0_11 = arith.constant 0 : index
    %14 = vector.load %arg8[%c0_10, %c0_11] : memref<1x128xf32, #tpu.memory_space<vmem>>, vector<1x128xf32>
    %c0_12 = arith.constant 0 : index
    %c0_13 = arith.constant 0 : index
    %15 = vector.load %arg9[%c0_12, %c0_13] : memref<1x128xf32, #tpu.memory_space<vmem>>, vector<1x128xf32>
    %16 = arith.mulf %15, %6 : vector<1x128xf32>
    %17 = arith.addf %14, %16 : vector<1x128xf32>
    %18 = vector.broadcast %17 : vector<1x128xf32> to vector<8x128xf32>
    %19 = arith.addf %13, %18 : vector<8x128xf32>
    %c0_14 = arith.constant 0 : index
    %c0_15 = arith.constant 0 : index
    %20 = vector.load %arg10[%c0_14, %c0_15] : memref<8x128xf32, #tpu.memory_space<vmem>>, vector<8x128xf32>
    tpu.vector_store %arg10[%c0_14, %c0_15], %19 {strides = array<i32>} : memref<8x128xf32, #tpu.memory_space<vmem>>, vector<8x128xf32>,
    return
  }
  func.func @transform_0(%arg0: i32, %arg1: i32, %arg2: i32) -> (i32, i32) {
    %c0_i32 = arith.constant 0 : i32
    return %arg0, %arg2 : i32, i32
  }
  func.func @transform_1(%arg0: i32, %arg1: i32, %arg2: i32) -> (i32, i32) {
    %c0_i32 = arith.constant 0 : i32
    %c0_i32_0 = arith.constant 0 : i32
    return %c0_i32, %arg2 : i32, i32
  }
  func.func @transform_2(%arg0: i32, %arg1: i32, %arg2: i32) -> (i32, i32) {
    %c0_i32 = arith.constant 0 : i32
    return %arg2, %arg1 : i32, i32
  }
  func.func @transform_3(%arg0: i32, %arg1: i32, %arg2: i32) -> (i32, i32) {
    %c0_i32 = arith.constant 0 : i32
    return %arg2, %arg1 : i32, i32
  }
  func.func @transform_4(%arg0: i32, %arg1: i32, %arg2: i32) -> (i32, i32) {
    %c0_i32 = arith.constant 0 : i32
    %c0_i32_0 = arith.constant 0 : i32
    return %c0_i32, %arg1 : i32, i32
  }
  func.func @transform_5(%arg0: i32, %arg1: i32, %arg2: i32) -> (i32, i32) {
    %c0_i32 = arith.constant 0 : i32
    %c0_i32_0 = arith.constant 0 : i32
    return %c0_i32, %arg1 : i32, i32
  }
  func.func @transform_6(%arg0: i32, %arg1: i32, %arg2: i32) -> (i32, i32) {
    %c0_i32 = arith.constant 0 : i32
    %c0_i32_0 = arith.constant 0 : i32
    return %c0_i32, %arg1 : i32, i32
  }
  func.func @transform_7(%arg0: i32, %arg1: i32, %arg2: i32) -> (i32, i32) {
    %c0_i32 = arith.constant 0 : i32
    return %arg0, %arg1 : i32, i32
  }
}

</mosaic_0001>

<bundles_post_ra>
// kernel: tpu_custom_call.1
= control target key start
LH: loop header
LB: loop body
LE: loop exit
PB: predicated region body
PF: predicated region fallthrough
CT: control target
= control target key end

     0   :  { %s1691_s0 = inlined_call_operand.hbm [shape: bf16[16,256], index: 0, kind: input, shape index: {}]   ;;  %s1692_s1 = inlined_call_operand.hbm [shape: f32[1,256], index: 1, kind: input, shape index: {}]   ;;  %s1693_s2 = inlined_call_operand.hbm [shape: bf16[256,128], index: 2, kind: input, shape index: {}]   ;;  %s1694_s3 = inlined_call_operand.hbm [shape: bf16[256,128], index: 3, kind: input, shape index: {}]   ;;  %s1695_s4 = inlined_call_operand.vmem [shape: f32[1,128], index: 4, kind: input, shape index: {}]   ;;  %s1696_s5 = inlined_call_operand.vmem [shape: f32[1,128], index: 5, kind: input, shape index: {}]   ;;  %s1697_s6 = inlined_call_operand.vmem [shape: f32[1,128], index: 6, kind: input, shape index: {}]   ;;  %s1698_s7 = inlined_call_operand.hbm [shape: f32[16,128], index: 7, kind: output, shape index: {}]  }
   0x1   :  { %1699 = sst [smem:[#allocation15_spill]] %s1692_s1 }
   0x2   :  { %1700 = sst [smem:[#allocation16_spill]] %s1693_s2 }
   0x3   :  { %1701 = sst [smem:[#allocation17_spill]] %s1694_s3 }
   0x4   :  { %12 = vsyncpa [#allocation3], 0 }
   0x5   :  { %14 = vsyncpa [#allocation3 + $0x1], 0 }
   0x6   :  { %15 = vsyncpa [#allocation6], 0 }
   0x7   :  { %16 = vsyncpa [#allocation9], 0 }
   0x8   :  { %17 = vsyncpa [#allocation4], 0 }
   0x9   :  { %19 = vsyncpa [#allocation4 + $0x1], 0  ;;  %s1501_s24 = smov 0   ;;  %s1503_s25 = smov 0  }
   0xa   :  { %s1505_s26 = smov 0   ;;  %s1507_s27 = smov 0  }
   0xb   :  { %s1509_s28 = smov 0   ;;  %s1511_s29 = smov 0  }
   0xc LB: > { %s964_s30 = sadd.s32 4294967295, %s1454_s29   ;;  %s965_s8 = sadd.s32 4294967294, %s1454_s29   ;;  %s1454_s29 = sphi %s1511_s29, %s25_s29   ;;  %s1450_s28 = sphi %s1509_s28, %s1717_s28   ;;  %s1446_s27 = sphi %s1507_s27, %s1716_s27   ;;  %s1442_s26 = sphi %s1505_s26, %s1715_s26   ;;  %s1438_s25 = sphi %s1503_s25, %s1714_s25   ;;  %s1434_s24 = sphi %s1501_s24, %s1713_s24  }
   0xd   : > { %p66_p0 = scmp.ne.s32.totalorder %s1438_s25, %s1434_s24  ;;  %p1535_p1 = scmp.eq.s32.totalorder %s964_s30, 0 }
   0xe   : > { %p1539_p2 = scmp.eq.s32.totalorder %s964_s30, 1  ;;  %p258_p3 = scmp.eq.s32.totalorder %s965_s8, 1 }
   0xf   : > { %p1545_p4 = por %p1535_p1, %p66_p0  ;;  %p966_p5 = scmp.ge.s32.totalorder %s1454_s29, 1 }
  0x10   : > { %p1550_p6 = por %p258_p3, %p66_p0  ;;  %p265_p7 = scmp.lt.s32.totalorder %s1454_s29, 3 }
  0x11   : > { %s1706_s1 = sld [smem:[#allocation15_spill]]  ;;  %p973_p9 = scmp.ge.s32.totalorder %s1454_s29, 2 }
  0x12   : > { %p1558_p8 = pnand %p966_p5, %p265_p7  ;;  %s1456_s17 = smov [#allocation5]  }
  0x13   : > { %s281_s18 = sshll.u32 %s1456_s17, 4  ;;  %s1708_s2 = sld [smem:[#allocation16_spill]]  ;;  %s282_s18 = int_to_ptr.vmem [resolvable:$true] %s281_s18 }
  0x14   : > { %p1164_p10 = pneg %p1558_p8  ;;  %s1457_s23 = smov [#allocation7]  }
  0x15   : > { %s296_s30 = sshll.u32 %s1457_s23, 4  ;;  %s1458_s8 = smov 64   ;;  %s297_s30 = int_to_ptr.vmem [resolvable:$true] %s296_s30 }
  0x16   : > { %p1570_p11 = pnand %p1164_p10, %p1535_p1  ;;  %s1459_s13 = smov 4  }
  0x17   : > { %s279_s15 = sshll.u32 %s1706_s1, 4  ;;  %s1710_s3 = sld [smem:[#allocation17_spill]]  ;;  %s280_s15 = int_to_ptr.hbm [resolvable:$true] %s279_s15 }
  0x18   : > { %1167 = dma.hbm_to_vmem [thread:$0]  (!%p1570_p11), %s280_s15, 32, %s282_s18, [#allocation6]  }
  0x19   : > { %s294_s21 = sshll.u32 %s1708_s2, 4  ;;  %s1460_s20 = smov [#allocation8]   ;;  %s295_s21 = int_to_ptr.hbm [resolvable:$true] %s294_s21 }
  0x1a   : > { %1170 = dma.hbm_to_vmem [thread:$0]  (!%p1570_p11), %s295_s21, 2048, %s297_s30, [#allocation6], %s1458_s8, %s1458_s8, %s1459_s13  }
  0x1b   : > { %s314_s1 = sshll.u32 %s1460_s20, 4  ;;  %s53_s15 = sadd.s32 1, %s1442_s26  ;;  %s315_s1 = int_to_ptr.vmem [resolvable:$true] %s314_s1 }
  0x1c   : > { %s44_s18 = sadd.s32 1, %s1450_s28  ;;  %p60_p12 = scmp.ne.s32.totalorder %s1442_s26, %s1438_s25 }
  0x1d   : > { %s312_s19 = sshll.u32 %s1710_s3, 4  ;;  %p46_p13 = scmp.ge.s32.totalorder %s44_s18, 2  ;;  %s313_s19 = int_to_ptr.hbm [resolvable:$true] %s312_s19 }
  0x1e   : > { %1173 = dma.hbm_to_vmem [thread:$0]  (!%p1570_p11), %s313_s19, 2048, %s315_s1, [#allocation9], %s1458_s8, %s1458_s8, %s1459_s13  }
  0x1f   : > { %p61_p0 = scmp.eq.s32.totalorder %s1454_s29, 0  ;;  %p1590_p3 = por %p1539_p2, %p60_p12 }
  0x20   : > { %p1185_p5 = scmp.lt.s32.totalorder %s1454_s29, 2  ;;  %s1719_s18 = smov (%p46_p13, %s44_s18), 0 }
  0x21   : > { %p1597_p7 = por %p61_p0, %p60_p12  ;;  %s346_s1 = sand.u32 1, %s1442_s26  }
  0x22   : > { %s48_s22 = ssub.s32 %s1450_s28, %s1719_s18  ;;  %s974_s30 = sshll.u32 %s346_s1, 3 }
  0x23   : > { %p51_p10 = scmp.eq.s32.totalorder %s48_s22, 0  ;;  %s1115_s8 = sshll.u32 %s1450_s28, 3 }
  0x24   : > { %s357_s17 = scalar_lea.hbm %s1691_s0, %s1115_s8  ;;  %s350_s19 = scalar_lea.vmem [#allocation2], %s974_s30 }
  0x25   : > { %s1606_s10 = scalar_select %p51_p10, %s1442_s26, %s53_s15  }
  0x26   : > { %s361_s20 = sshll.u32 %s350_s19, 4  ;;  %s359_s2 = sshll.u32 %s357_s17, 4  ;;  %s362_s20 = int_to_ptr.vmem [resolvable:$true] %s361_s20  ;;  %s360_s2 = int_to_ptr.hbm [resolvable:$true] %s359_s2 }
  0x27   : > { %p1175_p2 = pnand %p1185_p5, %p1597_p7  ;;  %s347_s3 = scalar_lea.sflag [#allocation3], %s346_s1 }
  0x28   : > { %370 = sbr.rel (%p1558_p8) target bundleno = 227 (0xe3), region = 48  ;;  %s1618_s15 = sand.u32 (!%p1558_p8), 1, %s1438_s25  }
  0x29   : > { %1177 = dma.hbm_to_vmem [thread:$0]  (!%p1175_p2), %s360_s2, 128, %s362_s20, %s347_s3  }
  0x2a   : > { %s978_s22 = sshll.u32 (!%p1558_p8), %s1618_s15, 3  ;;  %s373_s30 = scalar_lea.sflag (!%p1558_p8), [#allocation3], %s1618_s15 }
  0x2b   : > { %s1624_s8 = scalar_lea.vmem (!%p1558_p8), [#allocation2], %s978_s22 }
  0x2d   : > { %1417 = dma.done.wait (%p1545_p4), %s373_s30, 128  }
  0x2e   : > { %1419 = vsyncadd (%p1545_p4), %s373_s30, 4294967168 }
  0x2f   : > { %1421 = dma.done.wait (%p1535_p1), [#allocation6], 2080  }
  0x30   : > { %1423 = vsyncadd (%p1535_p1), [#allocation6], 4294965216 }
  0x31   : > { %1425 = dma.done.wait (%p1535_p1), [#allocation9], 2048  }
  0x32   : > { %1427 = vsyncadd (%p1535_p1), [#allocation9], 4294965248  ;;  %v1139_v0 = vld [vmem:[#allocation8 + $0x38] sm:$0xff]  ;;  %v1138_v4 = vld [vmem:[#allocation8 + $0x30] sm:$0xff]  ;;  %s1112_s14 = sshll.u32 %s1446_s27, 3  ;;  %s431_s30 = scalar_lea.vmem [#allocation10], %s978_s22 }
  0x33   : > { %v1147_v1 = vld [vmem:[#allocation8 + $0x78] sm:$0xff]  ;;  %619 = vmatpush.bf16.msra.mxu0 %v1139_v0  ;;  %v1146_v5 = vld [vmem:[#allocation8 + $0x70] sm:$0xff]  ;;  %v1137_v8 = vld [vmem:[#allocation8 + $0x28] sm:$0xff]  ;;  %s799_s20 = scalar_lea.hbm %s1698_s7, %s1112_s14  ;;  %s788_s27 = scalar_lea.sflag [#allocation4], %s1618_s15 }
  0x34   : > { %v1123_v2 = vld [vmem:[#allocation7 + $0x38] sm:$0xff]  ;;  %632 = vmatpush.bf16.msra.mxu1 %v1147_v1  ;;  %v1122_v6 = vld [vmem:[#allocation7 + $0x30] sm:$0xff]  ;;  %v1145_v9 = vld [vmem:[#allocation8 + $0x68] sm:$0xff]  ;;  %s803_s2 = sshll.u32 %s799_s20, 4  ;;  %s1384_s22 = scalar_lea.hbm %s1698_s7, 16  ;;  %s804_s2 = int_to_ptr.hbm [resolvable:$true] %s803_s2 }
  0x35   : > { %v1131_v3 = vld [vmem:[#allocation7 + $0x78] sm:$0xff]  ;;  %752 = vmatpush.bf16.msra.mxu2 %v1123_v2  ;;  %v1130_v7 = vld [vmem:[#allocation7 + $0x70] sm:$0xff]  ;;  %v1121_v10 = vld [vmem:[#allocation7 + $0x28] sm:$0xff]  ;;  %s1378_s3 = sshra.s32 %s804_s2, 4  ;;  %s1379_s3 = int_to_ptr.hbm [resolvable:$true] %s1378_s3 }
  0x36   : > { %765 = vmatpush.bf16.msra.mxu3 %v1131_v3  ;;  %v1129_v11 = vld [vmem:[#allocation7 + $0x68] sm:$0xff]  ;;  %v1136_v12 = vld [vmem:[#allocation8 + $0x20] sm:$0xff]  ;;  %v1135_v16 = vld [vmem:[#allocation8 + $0x18] sm:$0xff]  ;;  %s1380_s9 = scalar_lea.hbm %s1379_s3, 8  ;;  %p1385_p11 = scmp.lt.s32.totalorder %s1379_s3, %s1698_s7 }
  0x37   : > { %620 = vmatpush.bf16.msra.mxu0 %v1138_v4  ;;  %v1144_v13 = vld [vmem:[#allocation8 + $0x60] sm:$0xff]  ;;  %v1143_v17 = vld [vmem:[#allocation8 + $0x58] sm:$0xff]  ;;  %v1134_v20 = vld [vmem:[#allocation8 + $0x10] sm:$0xff]  ;;  %p1381_p1 = scmp.ne.s32.totalorder %s1379_s3, %s1380_s9  ;;  %p1386_p12 = scmp.lt.s32.totalorder %s1384_s22, %s1380_s9 }
  0x38   : > { %633 = vmatpush.bf16.msra.mxu1 %v1146_v5  ;;  %v1120_v14 = vld [vmem:[#allocation7 + $0x20] sm:$0xff]  ;;  %v1119_v18 = vld [vmem:[#allocation7 + $0x18] sm:$0xff]  ;;  %v1142_v21 = vld [vmem:[#allocation8 + $0x50] sm:$0xff] }
  0x39   : > { %753 = vmatpush.bf16.msra.mxu2 %v1122_v6  ;;  %v1128_v15 = vld [vmem:[#allocation7 + $0x60] sm:$0xff]  ;;  %v1127_v19 = vld [vmem:[#allocation7 + $0x58] sm:$0xff]  ;;  %v1118_v24 = vld [vmem:[#allocation7 + $0x10] sm:$0xff]  ;;  %p1382_p4 = pnand %p1381_p1, %p1590_p3  ;;  %p1387_p13 = por %p1386_p12, %p1385_p11 }
  0x3a   : > { %766 = vmatpush.bf16.msra.mxu3 %v1130_v7  ;;  %v445_v22 = vld [vmem:[%s1624_s8] sm:$0xff]  ;;  %v448_v23 = vld [vmem:[#allocation5] sm:$0x3]  ;;  %v1132_v36 = vld [vmem:[#allocation8] sm:$0xff]  ;;  %s801_s8 = sshll.u32 %s431_s30, 4  ;;  %s802_s8 = int_to_ptr.vmem [resolvable:$true] %s801_s8 }
  0x3b   : > { %621 = vmatpush.bf16.msra.mxu0 %v1137_v8  ;;  %v1126_v25 = vld [vmem:[#allocation7 + $0x50] sm:$0xff]  ;;  %v446_v26 = vunpack.c.l.bf16 %v445_v22  ;;  %v450_v27 = vperm.slane %v448_v23, 0  ;;  %v447_v28 = vunpack.c.h.bf16 %v445_v22  ;;  %v451_v29 = vperm.slane %v448_v23, 1  ;;  %v1133_v30 = vld [vmem:[#allocation8 + $0x8] sm:$0xff]  ;;  %v1140_v37 = vld [vmem:[#allocation8 + $0x40] sm:$0xff]  ;;  %p1383_p8 = pneg %p1382_p4 }
  0x3c   : > { %634 = vmatpush.bf16.msra.mxu1 %v1145_v9  ;;  %v1141_v31 = vld [vmem:[#allocation8 + $0x48] sm:$0xff]  ;;  %v650_v38 = vunpack.c.l.b16 %v445_v22  ;;  %v651_v39 = vunpack.c.h.b16 %v445_v22  ;;  %v1116_v40 = vld [vmem:[#allocation7] sm:$0xff] }
  0x3d   : > { %754 = vmatpush.bf16.msra.mxu2 %v1121_v10  ;;  %v1117_v32 = vld [vmem:[#allocation7 + $0x8] sm:$0xff]  ;;  %v454_v34 = vmul.f32 %v450_v27, %v446_v26  ;;  %v455_v35 = vmul.f32 %v451_v29, %v447_v28  ;;  %v1124_v41 = vld [vmem:[#allocation7 + $0x40] sm:$0xff]  ;;  %p1388_p0 = pnand %p1387_p13, %p1383_p8 }
  0x3e   : > { %767 = vmatpush.bf16.msra.mxu3 %v1129_v11  ;;  %v1125_v33 = vld [vmem:[#allocation7 + $0x48] sm:$0xff]  ;;  %v652_v44 = vpack.c.b16 %v650_v38, %v650_v38  ;;  %v653_v45 = vpack.c.b16 %v651_v39, %v651_v39 }
  0x3f   : > { %622 = vmatpush.bf16.msra.mxu0 %v1136_v12  ;;  %v456_v42 = vpack.c.bf16 %v454_v34, %v454_v34  ;;  %v457_v43 = vpack.c.bf16 %v455_v35, %v455_v35  ;;  %v458_v46 = vld [vmem:[%s1695_s4] sm:$0x1] }
  0x40   : > { %635 = vmatpush.bf16.msra.mxu1 %v1144_v13  ;;  %v779_v47 = vld [vmem:[%s1697_s6] sm:$0x1] }
  0x41   : > { %755 = vmatpush.bf16.msra.mxu2 %v1120_v14  ;;  %v1243_v50 = vld [vmem:[%s1695_s4] ss:$0 sm:$0xff]  ;;  %v780_v51 = vmul.f32 %v779_v47, %v458_v46 }
  0x42   : > { %768 = vmatpush.bf16.msra.mxu3 %v1128_v15  ;;  %v778_v53 = vld [vmem:[%s1696_s5] sm:$0x1] }
  0x43   : > { %623 = vmatpush.bf16.msra.mxu0 %v1135_v16  ;;  %v781_v55 = vadd.f32 %v780_v51, %v778_v53 }
  0x44   : > { %636 = vmatpush.bf16.msra.mxu1 %v1143_v17 }
  0x45   : > { %756 = vmatpush.bf16.msra.mxu2 %v1119_v18  ;;  %v783_v59 = vperm.slane %v781_v55, 0 }
  0x46   : > { %769 = vmatpush.bf16.msra.mxu3 %v1127_v19 }
  0x47   : > { %624 = vmatpush.bf16.msra.mxu0 %v1134_v20 }
  0x48   : > { %637 = vmatpush.bf16.msra.mxu1 %v1142_v21 }
  0x49   : > { %757 = vmatpush.bf16.msra.mxu2 %v1118_v24 }
  0x4a   : > { %770 = vmatpush.bf16.msra.mxu3 %v1126_v25 }
  0x4b   : > { %625 = vmatpush.bf16.msra.mxu0 %v1133_v30 }
  0x4c   : > { %638 = vmatpush.bf16.msra.mxu1 %v1141_v31 }
  0x4d   : > { %758 = vmatpush.bf16.msra.mxu2 %v1117_v32 }
  0x4e   : > { %771 = vmatpush.bf16.msra.mxu3 %v1125_v33 }
  0x4f   : > { %626 = vmatpush.bf16.msra.mxu0 %v1132_v36 }
  0x50   : > { %639 = vmatpush.bf16.msra.mxu1 %v1140_v37 }
  0x51   : > { %759 = vmatpush.bf16.msra.mxu2 %v1116_v40 }
  0x52   : > { %772 = vmatpush.bf16.msra.mxu3 %v1124_v41  ;;  %627 = vmatmul.bf16.vlgmr.msra.gmra.mxu0 %v456_v42 }
  0x53   : > { %640 = vmatmul.bf16.vlgmr.msra.gmra.mxu1 %v457_v43 }
  0x54   : > { %760 = vmatmul.bf16.vlgmr.msra.gmra.mxu2 %v652_v44 }
  0x55   : > { %773 = vmatmul.bf16.vlgmr.msra.gmra.mxu3 %v653_v45 }
  0xcf   : > { %v628_v48 = vpop.f32.mrf.mxu0 }
  0xd0   : > { %v641_v49 = vpop.f32.mrf.mxu1 }
  0xd1   : > { %v642_v52 = vadd.f32 %v641_v49, %v628_v48 }
  0xd3   : > { %v648_v54 = vmul.f32 %v1243_v50, %v642_v52 }
  0xd7   : > { %v761_v56 = vpop.f32.mrf.mxu2  ;;  %v630_v60 = vpop.f32.mrf.mxu0 }
  0xd8   : > { %v774_v57 = vpop.f32.mrf.mxu3  ;;  %v762_v58 = vadd.f32 %v761_v56, %v648_v54  ;;  %v643_v61 = vpop.f32.mrf.mxu1 }
  0xda   : > { %v775_v62 = vadd.f32 %v774_v57, %v762_v58 }
  0xdc   : > { %v785_v63 = vadd.f32 %v783_v59, %v775_v62 }
  0xde   : > { %786 = vst [vmem:[%s431_s30] sm:$0xff] %v785_v63 }
  0xdf   : > { %v763_v0 = vpop.f32.mrf.mxu2 }
  0xe0   : > { %v776_v1 = vpop.f32.mrf.mxu3 }
  0xe1   : > { %1391 = shalt.err (!%p1388_p0)
}
  0xe2   : > { %1162 = dma.vmem_to_hbm [thread:$0]  (%p1590_p3), %s802_s8, 128, %s804_s2, %s788_s27  }
  0xe3 PF: > { %s815_s15 = sand.u32 1, %s1434_s24   ;;  %p1179_p5 = pnand %p973_p9, %p1550_p6 }
  0xe4   : > { %s816_s13 = scalar_lea.sflag [#allocation4], %s815_s15 }
  0xe5   : > { %p1180_p7 = pneg %p1179_p5 }
  0xe7   : > { %1429 = dma.done.wait (%p1180_p7), %s816_s13, 128  }
  0xe8   : > { %1431 = vsyncadd (%p1180_p7), %s816_s13, 4294967168  ;;  %s25_s29 = sadd.s32 1, %s1454_s29   ;;  %s1713_s24 = smov %s1438_s25 }
  0xe9   : > { %p22_p10 = scmp.ge.s32.totalorder %s25_s29, 4   ;;  %s1714_s25 = smov %s1442_s26 }
  0xea   : > { %s1715_s26 = smov %s1606_s10  ;;  %s1716_s27 = smov %s1450_s28 }
  0xeb   : > { %s1717_s28 = smov %s1719_s18  ;;  %24 = sbr.rel (!%p22_p10) target bundleno = 12 (0xc), region = 117 }
  0xf0   :  { %822 = vsyncpa [#allocation3], 1 }
  0xf1   :  { %824 = vsyncpa [#allocation3 + $0x1], 1 }
  0xf2   :  { %825 = vsyncpa [#allocation6], 1 }
  0xf3   :  { %826 = vsyncpa [#allocation9], 1 }
  0xf4   :  { %827 = vsyncpa [#allocation4], 1 }
  0xf5   :  { %829 = vsyncpa [#allocation4 + $0x1], 1 }

</bundles_post_ra>
